<compile_context>
chip_gen: v7x
topology: tpu7x:2x2x1
jax: 0.10.0
libtpu: 0.0.40
codegen_flags: <defaults>
</compile_context>

<pallas_src>
import functools
import math

import numpy as np
import jax
import jax.numpy as jnp
from jax.experimental import pallas as pl
from jax.experimental.pallas import tpu as pltpu

MIN_BIN_WIDTH = 1e-3
MIN_BIN_HEIGHT = 1e-3
MIN_DERIVATIVE = 1e-3
LN_EPS = 1e-5

_HIGH = jax.lax.Precision.HIGHEST


def _erf(x):
    # float32 erf via the Eigen/XLA rational approximation (mul/add/div only),
    # preserving torch.nn.functional.gelu's exact-erf semantics to ~1e-7.
    x = jnp.clip(x, -4.0, 4.0)
    x2 = x * x
    a = jnp.float32(-2.72614225801306e-10)
    a = a * x2 + jnp.float32(2.77068142495902e-08)
    a = a * x2 + jnp.float32(-2.10102402082508e-06)
    a = a * x2 + jnp.float32(-5.69250639462346e-05)
    a = a * x2 + jnp.float32(-7.34990630326855e-04)
    a = a * x2 + jnp.float32(-2.95459980854025e-03)
    a = a * x2 + jnp.float32(-1.60960333262415e-02)
    a = a * x
    b = jnp.float32(-1.45660718464996e-05)
    b = b * x2 + jnp.float32(-2.13374055278905e-04)
    b = b * x2 + jnp.float32(-1.68282697438203e-03)
    b = b * x2 + jnp.float32(-7.37332916720468e-03)
    b = b * x2 + jnp.float32(-1.42647390514189e-02)
    return a / b


@functools.lru_cache(maxsize=1)
def _roll_matches_numpy():
    """True iff pltpu.roll(x, s) == jnp.roll(x, s) (elements move to higher lanes)."""
    def k(x_ref, o_ref):
        o_ref[...] = pltpu.roll(x_ref[...], shift=1, axis=1)

    x = jax.lax.broadcasted_iota(jnp.float32, (8, 128), 1)
    out = pl.pallas_call(k, out_shape=jax.ShapeDtypeStruct((8, 128), jnp.float32))(x)
    return bool(out[0, 1] == 0.0)


# --------------------------------------------------------------------------
# Fused kernel factory.  One grid step = one batch element; everything is in
# (channels, T) layout (channels on sublanes, time on lanes).
# --------------------------------------------------------------------------
def _make_conv_flow_kernel(Ch, Tp, F, L, K, nb, tail_bound,
                           mm_bf16, approx_recip, gelu_tanh, roll_np):
    lo = -float(tail_bound)
    hi = float(tail_bound)
    inv_sqrt_f = 1.0 / math.sqrt(F)
    # proj rows are host-permuted to [widths | heights | derivs], channel-major:
    W0 = 0                 # widths  for ch: rows [W0 + ch*nb,       W0 + (ch+1)*nb)
    H0 = nb * Ch           # heights for ch: rows [H0 + ch*nb,       H0 + (ch+1)*nb)
    D0 = 2 * nb * Ch       # derivs  for ch: rows [D0 + ch*(nb-1),   D0 + (ch+1)*(nb-1))
    # derivative at the two boundary knots for 'linear' tails (== 1.0 up to fp)
    boundary_der = MIN_DERIVATIVE + math.log1p(
        math.exp(math.log(math.exp(1.0 - MIN_DERIVATIVE) - 1.0)))
    mm_dtype = jnp.bfloat16 if mm_bf16 else jnp.float32
    mm_prec = None if mm_bf16 else _HIGH

    def recip(x):
        # approx=True -> EUP vrcp (frees the saturated VALU divide path)
        return pl.reciprocal(x, approx=True) if approx_recip else 1.0 / x

    def gelu(x):
        if gelu_tanh:
            # tanh approximation (EUP tanh): cheaper on v5e, ~1e-3 off exact erf.
            c = math.sqrt(2.0 / math.pi)
            return 0.5 * x * (1.0 + jnp.tanh(c * (x + 0.044715 * x * x * x)))
        return 0.5 * x * (1.0 + _erf(x * jnp.float32(1.0 / math.sqrt(2.0))))

    def layer_norm(y, g, b):
        # LayerNorm over channels (sublane axis 0); g, b are (F, 1)
        mu = jnp.mean(y, axis=0, keepdims=True)
        var = jnp.mean((y - mu) * (y - mu), axis=0, keepdims=True)
        return (y - mu) * jax.lax.rsqrt(var + LN_EPS) * g + b

    def mdot(a, b):
        # 1x1 conv as an MXU matmul; bf16 operands when enabled, f32 accumulate.
        return jnp.dot(a, b.astype(mm_dtype),
                       preferred_element_type=jnp.float32, precision=mm_prec)

    def kernel(xin_ref, pre_w_ref, pre_b_ref, sep_w_ref, vecs_ref,
               c1_w_ref, proj_w_ref, proj_b_ref, x1_out_ref, ld_ref):
        xin = xin_ref[...]                         # (2*Ch + 1, Tp): [x0 ; x1 ; mask]
        x0 = xin[0:Ch, :]
        x1 = xin[Ch:2 * Ch, :]
        m = xin[2 * Ch:2 * Ch + 1, :]              # (1, Tp)

        lane = jax.lax.broadcasted_iota(jnp.int32, (1, Tp), 1)
        mF = jnp.broadcast_to(m, (F, Tp))          # hoisted mask broadcast (reused L+1x)

        def shift_time(z, o):
            # shifted[:, t] = z[:, t + o], zero outside [0, Tp):
            # XLU lane rotate + lane-mask select (no slice/concat VMEM copies).
            if o == 0:
                return z
            if abs(o) >= Tp:
                return jnp.zeros_like(z)
            amt = (-o) % Tp if roll_np else o % Tp
            rolled = pltpu.roll(z, shift=amt, axis=1)
            keep = (lane < Tp - o) if o > 0 else (lane >= -o)
            return jnp.where(keep, rolled, 0.0)

        # ---- pre: 1x1 conv ----
        if Ch >= 8:
            h = jnp.dot(pre_w_ref[...], x0, preferred_element_type=jnp.float32,
                        precision=_HIGH) + pre_b_ref[...]
        else:
            # Ch is tiny (1-2): cheaper / layout-friendlier as broadcast FMAs.
            h = jnp.zeros((F, Tp), jnp.float32) + pre_b_ref[...]
            for ci in range(Ch):
                h = h + pre_w_ref[:, ci:ci + 1] * x0[ci:ci + 1, :]

        # ---- DDSConv (dropout p = 0 -> identity) ----
        # vecs layout: [sep_b, ln1_g, ln1_b, c1_b, ln2_g, ln2_b], each (F, 1)
        for i in range(L):
            xm = h * mF
            d = K ** i
            pad = (K * d - d) // 2
            y = jnp.zeros((F, Tp), jnp.float32)
            for k in range(K):
                y = y + shift_time(xm, k * d - pad) * sep_w_ref[i, k]
            y = y + vecs_ref[i, 0]
            y = gelu(layer_norm(y, vecs_ref[i, 1], vecs_ref[i, 2]))
            y = mdot(c1_w_ref[i], y) + vecs_ref[i, 3]
            y = gelu(layer_norm(y, vecs_ref[i, 4], vecs_ref[i, 5]))
            h = h + y
        h = h * mF                                 # DDSConv returns x * x_mask

        # ---- proj: 1x1 conv (rows pre-permuted host-side) ----
        hh = mdot(proj_w_ref[...], h) + proj_b_ref[...]
        hh = hh * m                                # (OutC, Tp)

        # ---- unconstrained rational-quadratic spline (forward, linear tails),
        #      vectorized over bins (sublane-dense (nb, Tp) blocks) ----
        sub_bin = jax.lax.broadcasted_iota(jnp.int32, (nb, 1), 0)
        eps_last = jnp.where(sub_bin == nb - 1, 1e-6, 0.0)   # right-edge inclusive
        bd_row = jnp.full((1, Tp), boundary_der, jnp.float32)
        lo_row = jnp.full((1, Tp), lo, jnp.float32)
        hi_row = jnp.full((1, Tp), hi, jnp.float32)

        def knots_from(block, min_v):
            # softmax over bins (axis 0) + min floor -> per-bin knot positions.
            mx = jnp.max(block, axis=0, keepdims=True)         # (1, Tp)
            e = jnp.exp(block - mx)                            # one dense (nb, Tp) exp
            s = jnp.sum(e, axis=0, keepdims=True)
            frac = min_v + (1.0 - min_v * nb) * (e * recip(s))
            knots = [lo_row]                                   # left edge pinned exactly
            run = jnp.zeros((1, Tp), jnp.float32)
            for k in range(nb - 1):                            # tiny static prefix sum
                run = run + frac[k:k + 1, :]
                knots.append(lo + (hi - lo) * run)
            knots.append(hi_row)                               # right edge pinned exactly
            low = jnp.concatenate(knots[:nb], axis=0)          # (nb, Tp) left knots
            upp = jnp.concatenate(knots[1:], axis=0)           # (nb, Tp) right knots
            return low, upp

        outs = []
        lds = []
        for ch in range(Ch):
            x1c = x1[ch:ch + 1, :]                             # (1, Tp)
            inside = jnp.logical_and(x1c >= lo, x1c <= hi)
            xc = jnp.clip(x1c, lo, hi)

            w_lo, w_hi = knots_from(
                hh[W0 + ch * nb: W0 + (ch + 1) * nb, :] * inv_sqrt_f, MIN_BIN_WIDTH)
            h_lo, h_hi = knots_from(
                hh[H0 + ch * nb: H0 + (ch + 1) * nb, :] * inv_sqrt_f, MIN_BIN_HEIGHT)
            wdt = w_hi - w_lo
            hgt = h_hi - h_lo

            # derivatives = min_derivative + softplus(.), boundaries fixed ('linear')
            ud = hh[D0 + ch * (nb - 1): D0 + (ch + 1) * (nb - 1), :]
            sp = jnp.where(ud > 20.0, ud,
                           jnp.log(1.0 + jnp.exp(jnp.minimum(ud, 20.0))))
            d_int = MIN_DERIVATIVE + sp                        # (nb-1, Tp)
            d_lo = jnp.concatenate([bd_row, d_int], axis=0)    # deriv at left knots
            d_hi = jnp.concatenate([d_int, bd_row], axis=0)    # deriv at right knots

            # bin search: one (nb, Tp) one-hot block; all 6 gathers = mul + sublane sum
            oh = jnp.logical_and(xc >= w_lo, xc < w_hi + eps_last).astype(jnp.float32)
            osum = jnp.sum(oh, axis=0, keepdims=True)
            miss = 1.0 - osum                  # 0 normally; keeps math finite otherwise

            def gather(v):
                return jnp.sum(oh * v, axis=0, keepdims=True)

            g_cw = gather(w_lo)
            g_w = gather(wdt) + miss
            g_ch = gather(h_lo)
            g_h = gather(hgt) + miss
            g_d0 = gather(d_lo)
            g_d1 = gather(d_hi)

            inv_gw = recip(g_w)
            theta = (xc - g_cw) * inv_gw
            tomt = theta * (1.0 - theta)
            delta = g_h * inv_gw                               # heights / widths
            numer = g_h * (delta * theta * theta + g_d0 * tomt)
            denom = delta + (g_d0 + g_d1 - 2.0 * delta) * tomt
            inv_den = recip(denom)
            out_in = g_ch + numer * inv_den
            d_num = (delta * delta) * (g_d1 * theta * theta + 2.0 * delta * tomt
                                       + g_d0 * (1.0 - theta) * (1.0 - theta))
            lad_in = jnp.log(d_num * inv_den * inv_den)        # log(n) - 2*log(d)

            outs.append(jnp.where(inside, out_in, x1c))        # linear tails: identity
            lds.append(jnp.sum(jnp.where(inside, lad_in, 0.0) * m,
                               axis=1, keepdims=True))         # masked (1,1) reduction

        x1_out_ref[...] = jnp.concatenate(outs, axis=0)
        ld_ref[...] = jnp.concatenate(lds, axis=0)

    return kernel


# --------------------------------------------------------------------------
# Parameters (PyTorch Conv1d / LayerNorm layouts, 1x1 kernel dims squeezed)
# --------------------------------------------------------------------------
def init_params(key, in_channels, filter_channels, kernel_size, n_layers, num_bins):
    Ch = in_channels // 2
    F = filter_channels
    K = kernel_size
    L = n_layers
    OutC = Ch * (num_bins * 3 - 1)
    ks = jax.random.split(key, 6)
    return {
        'pre_w': 0.1 * jax.random.normal(ks[0], (F, Ch), jnp.float32),    # (out, in)
        'pre_b': 0.01 * jax.random.normal(ks[1], (F,), jnp.float32),
        'sep_w': 0.1 * jax.random.normal(ks[2], (L, F, K), jnp.float32),  # depthwise (ch, tap)
        'sep_b': 0.01 * jax.random.normal(ks[3], (L, F), jnp.float32),
        'c1_w': 0.1 * jax.random.normal(ks[4], (L, F, F), jnp.float32),   # (out, in)
        'c1_b': 0.01 * jax.random.normal(ks[5], (L, F), jnp.float32),
        'ln1_g': jnp.ones((L, F), jnp.float32),
        'ln1_b': jnp.zeros((L, F), jnp.float32),
        'ln2_g': jnp.ones((L, F), jnp.float32),
        'ln2_b': jnp.zeros((L, F), jnp.float32),
        # proj is zero-initialized in the PyTorch module __init__
        'proj_w': jnp.zeros((OutC, F), jnp.float32),
        'proj_b': jnp.zeros((OutC,), jnp.float32),
    }


def _proj_row_perm(Ch, nb):
    # Regroup proj output rows as [widths | heights | derivatives], channel-major
    # and bin-minor, so each channel's parameters slice as contiguous (nb, T) /
    # (nb-1, T) sublane-dense blocks.  Pure host-side re-indexing (exact math).
    rows_per_ch = 3 * nb - 1
    perm = []
    for base, cnt in ((0, nb), (nb, nb), (2 * nb, nb - 1)):
        for ch in range(Ch):
            for k in range(cnt):
                perm.append(ch * rows_per_ch + base + k)
    return np.asarray(perm, np.int32)


# --------------------------------------------------------------------------
# Wrapper
# --------------------------------------------------------------------------
def conv_flow_forward(params, x, x_mask, *, filter_channels, kernel_size,
                      n_layers, num_bins, tail_bound,
                      use_bf16_matmul=True, approx_reciprocal=True,
                      gelu_tanh=False):
    B, C_in, T = x.shape
    Ch = C_in // 2
    F = filter_channels
    L = n_layers
    K = kernel_size
    nb = num_bins
    OutC = Ch * (3 * nb - 1)
    Tp = ((T + 127) // 128) * 128              # lane-dense blocks and stores

    x = x.astype(jnp.float32)
    mask = x_mask.astype(jnp.float32)          # (B, 1, T)
    # Single fused per-batch data block [x0 ; x1 ; mask] -> one data DMA per step.
    xin = jnp.concatenate([x, mask], axis=1)   # (B, 2*Ch + 1, T)
    if Tp != T:
        xin = jnp.pad(xin, ((0, 0), (0, 0), (0, Tp - T)))   # mask pads with 0

    mm_dtype = jnp.bfloat16 if use_bf16_matmul else jnp.float32

    # ---- tiny host-side param reshapes into the kernel's layouts ----
    pre_w = params['pre_w']                                  # (F, Ch)
    pre_b = params['pre_b'].reshape(F, 1)
    sep_w = jnp.transpose(params['sep_w'], (0, 2, 1)).reshape(L, K, F, 1)
    # per-layer (F,1) vectors packed into one array:
    # [sep_b, ln1_g, ln1_b, c1_b, ln2_g, ln2_b]
    vecs = jnp.stack([params['sep_b'], params['ln1_g'], params['ln1_b'],
                      params['c1_b'], params['ln2_g'], params['ln2_b']],
                     axis=1).reshape(L, 6, F, 1)
    c1_w = params['c1_w'].astype(mm_dtype)                   # (L, F, F)
    perm = _proj_row_perm(Ch, nb)
    proj_w = params['proj_w'][perm, :].astype(mm_dtype)      # (OutC, F), rows regrouped
    proj_b = params['proj_b'][perm].reshape(OutC, 1)

    kernel = _make_conv_flow_kernel(Ch, Tp, F, L, K, nb, tail_bound,
                                    use_bf16_matmul, approx_reciprocal,
                                    gelu_tanh, _roll_matches_numpy())

    def _const(arr):
        n = arr.ndim
        return pl.BlockSpec(arr.shape, lambda b, n=n: (0,) * n)

    in_specs = [
        pl.BlockSpec((None, 2 * Ch + 1, Tp), lambda b: (b, 0, 0)),   # fused data block
        _const(pre_w), _const(pre_b), _const(sep_w), _const(vecs),
        _const(c1_w), _const(proj_w), _const(proj_b),
    ]
    out_specs = (
        pl.BlockSpec((None, Ch, Tp), lambda b: (b, 0, 0)),   # transformed x1
        pl.BlockSpec((None, Ch, 1), lambda b: (b, 0, 0)),    # masked logabsdet sums
    )

    x1_new, ld = pl.pallas_call(
        kernel,
        grid=(B,),
        in_specs=in_specs,
        out_specs=out_specs,
        out_shape=(jax.ShapeDtypeStruct((B, Ch, Tp), jnp.float32),
                   jax.ShapeDtypeStruct((B, Ch, 1), jnp.float32)),
        compiler_params=pltpu.CompilerParams(
            dimension_semantics=("parallel",),
            # Tiny footprint; 32 MiB leaves headroom on v7x (64 MiB physical VMEM).
            vmem_limit_bytes=32 * 1024 * 1024),
    )(xin, pre_w, pre_b, sep_w, vecs, c1_w, proj_w, proj_b)

    x0 = x[:, :Ch, :]
    x_out = jnp.concatenate([x0, x1_new[:, :, :T]], axis=1) * mask   # (B, C_in, T)
    logdet = jnp.sum(ld, axis=(1, 2))                                # (B,)
    return x_out, logdet


# --------------------------------------------------------------------------
# Pure-jnp (f32, high precision) reference of ConvFlow.forward(reverse=False,
# g=None) used to validate the kernel in __main__.
# --------------------------------------------------------------------------
def _layer_norm_ref(y, g, b):
    mu = jnp.mean(y, axis=1, keepdims=True)
    var = jnp.mean((y - mu) ** 2, axis=1, keepdims=True)
    return (y - mu) / jnp.sqrt(var + LN_EPS) * g[None, :, None] + b[None, :, None]


def _rq_spline_ref(x1, uw, uh, ud, tail_bound, nb):
    lo, hi = -tail_bound, tail_bound
    inside = (x1 >= lo) & (x1 <= hi)
    const = math.log(math.exp(1.0 - MIN_DERIVATIVE) - 1.0)
    ud = jnp.pad(ud, ((0, 0), (0, 0), (0, 0), (1, 1)), constant_values=const)
    d = MIN_DERIVATIVE + jax.nn.softplus(ud)

    def knots(u, min_v):
        f = jax.nn.softmax(u, axis=-1)
        f = min_v + (1.0 - min_v * nb) * f
        c = jnp.cumsum(f, axis=-1)
        c = jnp.pad(c, ((0, 0), (0, 0), (0, 0), (1, 0)))
        c = (hi - lo) * c + lo
        c = c.at[..., 0].set(lo).at[..., -1].set(hi)
        return c, c[..., 1:] - c[..., :-1]

    cw, w = knots(uw, MIN_BIN_WIDTH)
    chh, hgt = knots(uh, MIN_BIN_HEIGHT)

    xc = jnp.clip(x1, lo, hi)
    cw_s = cw.at[..., -1].add(1e-6)
    idx = jnp.sum((xc[..., None] >= cw_s).astype(jnp.int32), axis=-1) - 1
    idx = jnp.clip(idx, 0, nb - 1)[..., None]

    def take(a):
        return jnp.take_along_axis(a, idx, axis=-1)[..., 0]

    icw, ibw, ich, ih = take(cw), take(w), take(chh), take(hgt)
    id0, id1 = take(d), take(d[..., 1:])
    delta = ih / ibw
    th = (xc - icw) / ibw
    tomt = th * (1.0 - th)
    numer = ih * (delta * th ** 2 + id0 * tomt)
    denom = delta + (id0 + id1 - 2.0 * delta) * tomt
    out_in = ich + numer / denom
    dnum = delta ** 2 * (id1 * th ** 2 + 2.0 * delta * tomt + id0 * (1.0 - th) ** 2)
    lad_in = jnp.log(dnum) - 2.0 * jnp.log(denom)
    return jnp.where(inside, out_in, x1), jnp.where(inside, lad_in, 0.0)


def conv_flow_reference(params, x, x_mask, *, filter_channels, kernel_size,
                        n_layers, num_bins, tail_bound):
    B, C_in, T = x.shape
    Ch = C_in // 2
    F_ = filter_channels
    nb = num_bins
    x = x.astype(jnp.float32)
    m = x_mask.astype(jnp.float32)
    x0, x1 = x[:, :Ch], x[:, Ch:]

    h = jnp.einsum('oi,bit->bot', params['pre_w'], x0,
                   precision=_HIGH) + params['pre_b'][None, :, None]
    for i in range(n_layers):
        d = kernel_size ** i
        pad = (kernel_size * d - d) // 2
        y = jax.lax.conv_general_dilated(
            h * m, params['sep_w'][i][:, None, :], window_strides=(1,),
            padding=[(pad, pad)], rhs_dilation=(d,),
            dimension_numbers=('NCH', 'OIH', 'NCH'),
            feature_group_count=F_, precision=_HIGH)
        y = y + params['sep_b'][i][None, :, None]
        y = jax.nn.gelu(_layer_norm_ref(y, params['ln1_g'][i], params['ln1_b'][i]),
                        approximate=False)
        y = jnp.einsum('oi,bit->bot', params['c1_w'][i], y,
                       precision=_HIGH) + params['c1_b'][i][None, :, None]
        y = jax.nn.gelu(_layer_norm_ref(y, params['ln2_g'][i], params['ln2_b'][i]),
                        approximate=False)
        h = h + y
    h = h * m

    hh = jnp.einsum('oi,bit->bot', params['proj_w'], h,
                    precision=_HIGH) + params['proj_b'][None, :, None]
    hh = (hh * m).reshape(B, Ch, 3 * nb - 1, T).transpose(0, 1, 3, 2)
    uw = hh[..., :nb] / math.sqrt(F_)
    uh = hh[..., nb:2 * nb] / math.sqrt(F_)
    ud = hh[..., 2 * nb:]
    x1n, lad = _rq_spline_ref(x1, uw, uh, ud, tail_bound, nb)
    out = jnp.concatenate([x0, x1n], axis=1) * m
    logdet = jnp.sum(lad * m, axis=(1, 2))
    return out, logdet


if __name__ == "__main__":
    B, C_in, T = 2, 4, 16
    filter_channels, kernel_size, n_layers = 32, 3, 3
    num_bins, tail_bound = 10, 5.0
    Ch = C_in // 2
    OutC = Ch * (3 * num_bins - 1)

    key = jax.random.PRNGKey(0)
    kx, kp, kw, kb = jax.random.split(key, 4)
    x = jax.random.normal(kx, (B, C_in, T), jnp.float32)
    lengths = jnp.array([T, 11], jnp.int32)
    x_mask = (jnp.arange(T)[None, None, :] < lengths[:, None, None]).astype(jnp.float32)

    params = init_params(kp, C_in, filter_channels, kernel_size, n_layers, num_bins)
    cfg = dict(filter_channels=filter_channels, kernel_size=kernel_size,
               n_layers=n_layers, num_bins=num_bins, tail_bound=tail_bound)

    # Correctness: exact-math config (f32 MXU operands, true divides) vs a
    # pure-jnp reference, with non-zero proj weights so the full conv +
    # permuted-proj + spline path is exercised.
    params_chk = dict(params)
    params_chk['proj_w'] = (0.3 / math.sqrt(filter_channels)) * \
        jax.random.normal(kw, (OutC, filter_channels), jnp.float32)
    params_chk['proj_b'] = 0.05 * jax.random.normal(kb, (OutC,), jnp.float32)
    ref_out, ref_ld = conv_flow_reference(params_chk, x, x_mask, **cfg)
    chk_out, chk_ld = conv_flow_forward(params_chk, x, x_mask, **cfg,
                                        use_bf16_matmul=False,
                                        approx_reciprocal=False)
    np.testing.assert_allclose(np.asarray(chk_out), np.asarray(ref_out),
                               rtol=2e-2, atol=2e-2)
    np.testing.assert_allclose(np.asarray(chk_ld), np.asarray(ref_ld),
                               rtol=2e-2, atol=2e-2)

    # Default fast config (bf16 MXU operands, EUP approx reciprocals) on the
    # module's zero-initialized proj parameters.
    x_out, logdet = conv_flow_forward(params, x, x_mask, **cfg)
    jax.block_until_ready((x_out, logdet))
    assert x_out.shape == (B, C_in, T)
    assert logdet.shape == (B,)
    assert bool(jnp.all(jnp.isfinite(x_out))) and bool(jnp.all(jnp.isfinite(logdet)))
    print("KERNEL_OK")
</pallas_src>

<mosaic_0001>
module attributes {stable_mosaic.version = 11 : i64} {
  func.func @k(%arg0: memref<8x128xf32, #tpu.memory_space<vmem>>, %arg1: memref<8x128xf32, #tpu.memory_space<vmem>>) attributes {dimension_semantics = [], scalar_prefetch = 0 : i64, scratch_operands = 0 : i64, tpu.core_type = #tpu.core_type<tc>} {
    %c0 = arith.constant 0 : index
    %c0_0 = arith.constant 0 : index
    %0 = vector.load %arg0[%c0, %c0_0] : memref<8x128xf32, #tpu.memory_space<vmem>>, vector<8x128xf32>
    %c1_i32 = arith.constant 1 : i32
    %1 = tpu.dynamic_rotate %0 by %c1_i32 dim 1 : vector<8x128xf32>, i32 -> vector<8x128xf32>
    %c0_1 = arith.constant 0 : index
    %c0_2 = arith.constant 0 : index
    %2 = vector.load %arg1[%c0_1, %c0_2] : memref<8x128xf32, #tpu.memory_space<vmem>>, vector<8x128xf32>
    tpu.vector_store %arg1[%c0_1, %c0_2], %1 {strides = array<i32>} : memref<8x128xf32, #tpu.memory_space<vmem>>, vector<8x128xf32>,
    return
  }
}

</mosaic_0001>

<bundles_post_ra>
// kernel: tpu_custom_call.1
= control target key start
LH: loop header
LB: loop body
LE: loop exit
PB: predicated region body
PF: predicated region fallthrough
CT: control target
= control target key end

     0   :  { %6 = vsyncpa [#allocation3], 0  ;;  %s128_s0 = inlined_call_operand.hbm [shape: f32[8,128], index: 0, kind: input, shape index: {}]   ;;  %s129_s1 = inlined_call_operand.hbm [shape: f32[8,128], index: 1, kind: output, shape index: {}]  }
   0x1   :  { %7 = vsyncpa [#allocation4], 0  ;;  %s91_s6 = smov [#allocation2]   ;;  %s43_s10 = scalar_lea.hbm %s128_s0, 128 }
   0x2   :  { %s14_s7 = sshll.u32 %s91_s6, 4  ;;  %p44_p0 = scmp.ne.s32.totalorder %s128_s0, %s43_s10  ;;  %s15_s7 = int_to_ptr.vmem [resolvable:$true] %s14_s7 }
   0x3   :  { %p47_p1 = scmp.lt.u32.totalorder %s43_s10, %s128_s0 }
   0x5   :  { %p49_p2 = pnand %p47_p1, %p44_p0 }
   0x7   :  { %52 = shalt.err (!%p49_p2)
}
   0x8   :  { %s53_s15 = scalar_lea.vmem %s15_s7, 128  ;;  %p58_p4 = scmp.lt.s32.totalorder %s15_s7, %s15_s7 }
   0x9   :  { %p54_p3 = scmp.ne.s32.totalorder %s15_s7, %s53_s15  ;;  %p59_p5 = scmp.lt.s32.totalorder %s53_s15, %s53_s15 }
   0xb   :  { %p60_p6 = por %p59_p5, %p58_p4 }
   0xd   :  { %p61_p7 = pnand %p60_p6, %p54_p3 }
   0xf   :  { %64 = shalt.err (!%p61_p7)
}
  0x10   :  { %17 = dma.hbm_to_vmem [thread:$0]  %s128_s0, 128, %s15_s7, [#allocation3]  }
  0x11   :  { %87 = dma.done.wait [#allocation3], 128  }
  0x12   :  { %88 = vsyncadd [#allocation3], 4294967168  ;;  %v21_v0 = vld [vmem:[#allocation2] sm:$0xff]  ;;  %s92_s18 = smov 1   ;;  %s93_s19 = smov [#allocation5]  }
  0x13   :  { %22 = vrot.lane.b32.xlu0 %v21_v0, %s92_s18  ;;  %s31_s20 = sshll.u32 %s93_s19, 4  ;;  %s32_s20 = int_to_ptr.vmem [resolvable:$true] %s31_s20 }
  0x14   :  { %s65_s21 = scalar_lea.vmem %s32_s20, 128  ;;  %p70_p9 = scmp.lt.s32.totalorder %s32_s20, %s32_s20 }
  0x15   :  { %p66_p8 = scmp.ne.s32.totalorder %s32_s20, %s65_s21  ;;  %p71_p10 = scmp.lt.s32.totalorder %s65_s21, %s65_s21 }
  0x17   :  { %p72_p11 = por %p71_p10, %p70_p9 }
  0x19   :  { %p73_p12 = pnand %p72_p11, %p66_p8 }
  0x85   :  { %v23_v1 = vpop.permute.xlu0 %22 }
  0x86   :  { %24 = vst [vmem:[#allocation5] sm:$0xff] %v23_v1 }
  0x87   :  { %76 = shalt.err (!%p73_p12)
}
  0x88   :  { %s77_s0 = scalar_lea.hbm %s129_s1, 128 }
  0x89   :  { %p78_p13 = scmp.ne.s32.totalorder %s129_s1, %s77_s0  ;;  %p81_p0 = scmp.lt.u32.totalorder %s77_s0, %s129_s1 }
  0x8b   :  { %p83_p1 = pnand %p81_p0, %p78_p13 }
  0x8d   :  { %86 = shalt.err (!%p83_p1)
}
  0x8e   :  { %34 = dma.vmem_to_hbm [thread:$0]  %s32_s20, 128, %s129_s1, [#allocation4]  }
  0x8f   :  { %89 = dma.done.wait [#allocation4], 128  }
  0x90   :  { %90 = vsyncadd [#allocation4], 4294967168 }
  0x91   :  { %38 = vsyncpa [#allocation3], 1 }
  0x92   :  { %39 = vsyncpa [#allocation4], 1 }

</bundles_post_ra>
